<compile_context>
chip_gen: v7x
topology: tpu7x:2x2x1
jax: 0.10.0
libtpu: 0.0.40
codegen_flags: <defaults>
</compile_context>

<pallas_src>
import jax
import jax.numpy as jnp
from jax.experimental import pallas as pl
from jax.experimental.pallas import tpu as pltpu

STATE_DIM = 3
ACTION_DIM = 1
HIDDEN = 256


def critic_kernel(s_ref, a_ref, w1s_ref, w1a_ref, b1_ref,
                  w2_ref, b2_ref, w3_ref, b3_ref, o_ref):
    tm = s_ref.shape[0]
    hidden = b1_ref.shape[1]

    # ---- Layer 1 (K = state_dim + action_dim = 4): VPU FMAs, skip the MXU ----
    s = s_ref[...]                       # (TM, state_dim)  f32
    a = a_ref[...]                       # (TM, action_dim) f32
    w1s = w1s_ref[...]                   # (state_dim, H)   f32
    w1a = w1a_ref[...]                   # (action_dim, H)  f32
    h1 = jnp.broadcast_to(b1_ref[...], (tm, hidden))
    for k in range(s.shape[1]):          # static unrolled: 3 FMAs
        h1 = h1 + s[:, k:k + 1] * w1s[k:k + 1, :]
    for k in range(a.shape[1]):          # static unrolled: 1 FMA
        h1 = h1 + a[:, k:k + 1] * w1a[k:k + 1, :]
    h1 = jnp.maximum(h1, 0.0)

    # ---- Layer 2 (256x256): bf16 operands on the MXU, f32 accumulate ----
    h2 = jnp.dot(h1.astype(jnp.bfloat16), w2_ref[...],
                 preferred_element_type=jnp.float32)
    h2 = jnp.maximum(h2 + b2_ref[...], 0.0)     # bias/ReLU stay in f32

    # ---- Layer 3 (N = 1): broadcast-mul (VPU) + lane reduce (XLU) ----
    q = jnp.sum(h2 * w3_ref[...], axis=-1, keepdims=True)
    o_ref[...] = q + b3_ref[0]                  # scalar bias from SMEM


def critic_forward(state, action, params, *, block_m=512):
    """state: (B, state_dim), action: (B, action_dim) -> q: (B, 1)."""
    w1s, w1a, b1, w2, b2, w3, b3 = params
    state = state.astype(jnp.float32)
    action = action.astype(jnp.float32)

    B, state_dim = state.shape
    action_dim = action.shape[1]
    hidden = b1.shape[1]

    # Batch tile: full batch when small (full-array block is always legal),
    # otherwise 512 rows (multiple of 8; last tile may be partial).
    tm = min(block_m, B)
    grid = (pl.cdiv(B, tm),)

    out = pl.pallas_call(
        critic_kernel,
        out_shape=jax.ShapeDtypeStruct((B, 1), jnp.float32),
        grid=grid,
        in_specs=[
            pl.BlockSpec((tm, state_dim), lambda i: (i, 0)),       # state tile
            pl.BlockSpec((tm, action_dim), lambda i: (i, 0)),      # action tile
            pl.BlockSpec((state_dim, hidden), lambda i: (0, 0)),   # W1_s (resident)
            pl.BlockSpec((action_dim, hidden), lambda i: (0, 0)),  # W1_a (resident)
            pl.BlockSpec((1, hidden), lambda i: (0, 0)),           # b1
            pl.BlockSpec((hidden, hidden), lambda i: (0, 0)),      # W2 (bf16, resident)
            pl.BlockSpec((1, hidden), lambda i: (0, 0)),           # b2
            pl.BlockSpec((1, hidden), lambda i: (0, 0)),           # W3 row
            pl.BlockSpec(memory_space=pltpu.MemorySpace.SMEM),     # b3 scalar
        ],
        out_specs=pl.BlockSpec((tm, 1), lambda i: (i, 0)),
        compiler_params=pltpu.CompilerParams(
            dimension_semantics=("parallel",),   # shards batch tiles across TCs (v7x)
        ),
    )(state, action, w1s, w1a, b1, w2, b2, w3, b3)

    return out


def init_critic_params(key, state_dim=STATE_DIM, action_dim=ACTION_DIM, hidden=HIDDEN):
    """Init mimicking nn.Linear defaults (uniform +/- 1/sqrt(fan_in)).

    Storage layout chosen for the kernel:
      W1 is split into W1_s (state_dim, H) and W1_a (action_dim, H)   [f32]
      W2 is (H, H)                                                    [bf16]
      W3 is stored as a (1, H) row                                    [f32]
      biases: b1 (1, H), b2 (1, H), b3 (1,)                           [f32]
    """
    in_dim = state_dim + action_dim
    k1, k2, k3, k4, k5, k6 = jax.random.split(key, 6)

    def uinit(k, shape, fan_in):
        bound = 1.0 / jnp.sqrt(fan_in)
        return jax.random.uniform(k, shape, jnp.float32, -bound, bound)

    w1 = uinit(k1, (in_dim, hidden), in_dim)
    w1s, w1a = w1[:state_dim], w1[state_dim:]
    b1 = uinit(k2, (1, hidden), in_dim)
    w2 = uinit(k3, (hidden, hidden), hidden).astype(jnp.bfloat16)
    b2 = uinit(k4, (1, hidden), hidden)
    w3 = uinit(k5, (1, hidden), hidden)
    b3 = uinit(k6, (1,), hidden)
    return (w1s, w1a, b1, w2, b2, w3, b3)


def critic_reference(state, action, params):
    """Pure-JAX reference with matching numerics (bf16 layer-2 matmul)."""
    w1s, w1a, b1, w2, b2, w3, b3 = params
    h1 = jnp.maximum(state @ w1s + action @ w1a + b1, 0.0)
    h2 = jnp.dot(h1.astype(jnp.bfloat16), w2, preferred_element_type=jnp.float32)
    h2 = jnp.maximum(h2 + b2, 0.0)
    return jnp.sum(h2 * w3, axis=-1, keepdims=True) + b3[0]


if __name__ == "__main__":
    key = jax.random.PRNGKey(0)
    kp, ks, ka = jax.random.split(key, 3)

    B = 2
    params = init_critic_params(kp)
    state = jax.random.normal(ks, (B, STATE_DIM), jnp.float32)
    action = jnp.tanh(jax.random.normal(ka, (B, ACTION_DIM), jnp.float32))  # actor-like output

    q = critic_forward(state, action, params)
    q = jax.block_until_ready(q)

    q_ref = critic_reference(state, action, params)
    assert q.shape == (B, 1), q.shape
    assert jnp.allclose(q, q_ref, atol=2e-2, rtol=2e-2), (q, q_ref)

    print("KERNEL_OK")
</pallas_src>

<mosaic_0001>
module attributes {stable_mosaic.version = 11 : i64} {
  func.func @critic_kernel(%arg0: i32, %arg1: memref<2x3xf32, #tpu.memory_space<vmem>>, %arg2: memref<2x1xf32, #tpu.memory_space<vmem>>, %arg3: memref<3x256xf32, #tpu.memory_space<vmem>>, %arg4: memref<1x256xf32, #tpu.memory_space<vmem>>, %arg5: memref<1x256xf32, #tpu.memory_space<vmem>>, %arg6: memref<256x256xbf16, #tpu.memory_space<vmem>>, %arg7: memref<1x256xf32, #tpu.memory_space<vmem>>, %arg8: memref<1x256xf32, #tpu.memory_space<vmem>>, %arg9: memref<1xf32, #tpu.memory_space<smem>>, %arg10: memref<2x1xf32, #tpu.memory_space<vmem>>) attributes {dimension_semantics = [#tpu.dimension_semantics<parallel>], iteration_bounds = array<i64: 1>, scalar_prefetch = 0 : i64, scratch_operands = 0 : i64, tpu.core_type = #tpu.core_type<tc>, window_params = [{transform_indices = @transform_0, window_bounds = array<i64: 2, 3>}, {transform_indices = @transform_1, window_bounds = array<i64: 2, 1>}, {pipeline_mode = #tpu.pipeline_mode<synchronous>, transform_indices = @transform_2, window_bounds = array<i64: 3, 256>}, {pipeline_mode = #tpu.pipeline_mode<synchronous>, transform_indices = @transform_3, window_bounds = array<i64: 1, 256>}, {pipeline_mode = #tpu.pipeline_mode<synchronous>, transform_indices = @transform_4, window_bounds = array<i64: 1, 256>}, {pipeline_mode = #tpu.pipeline_mode<synchronous>, transform_indices = @transform_5, window_bounds = array<i64: 256, 256>}, {pipeline_mode = #tpu.pipeline_mode<synchronous>, transform_indices = @transform_6, window_bounds = array<i64: 1, 256>}, {pipeline_mode = #tpu.pipeline_mode<synchronous>, transform_indices = @transform_7, window_bounds = array<i64: 1, 256>}, {transform_indices = @transform_8, window_bounds = array<i64: 1>}, {transform_indices = @transform_9, window_bounds = array<i64: 2, 1>}]} {
    %c0 = arith.constant 0 : index
    %c0_0 = arith.constant 0 : index
    %0 = vector.load %arg1[%c0, %c0_0] : memref<2x3xf32, #tpu.memory_space<vmem>>, vector<2x3xf32>
    %c0_1 = arith.constant 0 : index
    %c0_2 = arith.constant 0 : index
    %1 = vector.load %arg2[%c0_1, %c0_2] : memref<2x1xf32, #tpu.memory_space<vmem>>, vector<2x1xf32>
    %c0_3 = arith.constant 0 : index
    %c0_4 = arith.constant 0 : index
    %2 = vector.load %arg3[%c0_3, %c0_4] : memref<3x256xf32, #tpu.memory_space<vmem>>, vector<3x256xf32>
    %c0_5 = arith.constant 0 : index
    %c0_6 = arith.constant 0 : index
    %3 = vector.load %arg4[%c0_5, %c0_6] : memref<1x256xf32, #tpu.memory_space<vmem>>, vector<1x256xf32>
    %c0_7 = arith.constant 0 : index
    %c0_8 = arith.constant 0 : index
    %4 = vector.load %arg5[%c0_7, %c0_8] : memref<1x256xf32, #tpu.memory_space<vmem>>, vector<1x256xf32>
    %5 = vector.shape_cast %4 : vector<1x256xf32> to vector<1x256xf32>
    %6 = vector.broadcast %5 : vector<1x256xf32> to vector<2x256xf32>
    %7 = vector.extract_strided_slice %0 {offsets = [0, 0], sizes = [2, 1], strides = [1, 1]} : vector<2x3xf32> to vector<2x1xf32>
    %8 = vector.extract_strided_slice %2 {offsets = [0, 0], sizes = [1, 256], strides = [1, 1]} : vector<3x256xf32> to vector<1x256xf32>
    %9 = vector.broadcast %7 : vector<2x1xf32> to vector<2x256xf32>
    %10 = vector.broadcast %8 : vector<1x256xf32> to vector<2x256xf32>
    %11 = arith.mulf %9, %10 : vector<2x256xf32>
    %12 = arith.addf %6, %11 : vector<2x256xf32>
    %13 = vector.extract_strided_slice %0 {offsets = [0, 1], sizes = [2, 1], strides = [1, 1]} : vector<2x3xf32> to vector<2x1xf32>
    %14 = vector.extract_strided_slice %2 {offsets = [1, 0], sizes = [1, 256], strides = [1, 1]} : vector<3x256xf32> to vector<1x256xf32>
    %15 = vector.broadcast %13 : vector<2x1xf32> to vector<2x256xf32>
    %16 = vector.broadcast %14 : vector<1x256xf32> to vector<2x256xf32>
    %17 = arith.mulf %15, %16 : vector<2x256xf32>
    %18 = arith.addf %12, %17 : vector<2x256xf32>
    %19 = vector.extract_strided_slice %0 {offsets = [0, 2], sizes = [2, 1], strides = [1, 1]} : vector<2x3xf32> to vector<2x1xf32>
    %20 = vector.extract_strided_slice %2 {offsets = [2, 0], sizes = [1, 256], strides = [1, 1]} : vector<3x256xf32> to vector<1x256xf32>
    %21 = vector.broadcast %19 : vector<2x1xf32> to vector<2x256xf32>
    %22 = vector.broadcast %20 : vector<1x256xf32> to vector<2x256xf32>
    %23 = arith.mulf %21, %22 : vector<2x256xf32>
    %24 = arith.addf %18, %23 : vector<2x256xf32>
    %25 = vector.broadcast %1 : vector<2x1xf32> to vector<2x256xf32>
    %26 = vector.broadcast %3 : vector<1x256xf32> to vector<2x256xf32>
    %27 = arith.mulf %25, %26 : vector<2x256xf32>
    %28 = arith.addf %24, %27 : vector<2x256xf32>
    %cst = arith.constant 0.000000e+00 : f32
    %29 = vector.broadcast %cst : f32 to vector<2x256xf32>
    %30 = arith.maximumf %28, %29 : vector<2x256xf32>
    %31 = arith.truncf %30 : vector<2x256xf32> to vector<2x256xbf16>
    %c0_9 = arith.constant 0 : index
    %c0_10 = arith.constant 0 : index
    %32 = vector.load %arg6[%c0_9, %c0_10] : memref<256x256xbf16, #tpu.memory_space<vmem>>, vector<256x256xbf16>
    %cst_11 = arith.constant dense<0.000000e+00> : vector<2x256xf32>
    %33 = tpu.matmul %31, %32, %cst_11 {dimension_numbers = #tpu.dot_dimension_numbers<[1], [0], [0], [1], [0, 0, 1, 1], [], []>} : vector<2x256xbf16>, vector<256x256xbf16>, vector<2x256xf32> -> vector<2x256xf32>
    %c0_12 = arith.constant 0 : index
    %c0_13 = arith.constant 0 : index
    %34 = vector.load %arg7[%c0_12, %c0_13] : memref<1x256xf32, #tpu.memory_space<vmem>>, vector<1x256xf32>
    %35 = vector.broadcast %34 : vector<1x256xf32> to vector<2x256xf32>
    %36 = arith.addf %33, %35 : vector<2x256xf32>
    %cst_14 = arith.constant 0.000000e+00 : f32
    %37 = vector.broadcast %cst_14 : f32 to vector<2x256xf32>
    %38 = arith.maximumf %36, %37 : vector<2x256xf32>
    %c0_15 = arith.constant 0 : index
    %c0_16 = arith.constant 0 : index
    %39 = vector.load %arg8[%c0_15, %c0_16] : memref<1x256xf32, #tpu.memory_space<vmem>>, vector<1x256xf32>
    %40 = vector.broadcast %39 : vector<1x256xf32> to vector<2x256xf32>
    %41 = arith.mulf %38, %40 : vector<2x256xf32>
    %cst_17 = arith.constant dense<0.000000e+00> : vector<2xf32>
    %42 = vector.multi_reduction <add>, %41, %cst_17 [1] : vector<2x256xf32> to vector<2xf32>
    %43 = vector.shape_cast %42 : vector<2xf32> to vector<2x1xf32>
    %c0_18 = arith.constant 0 : index
    %44 = memref.load %arg9[%c0_18] : memref<1xf32, #tpu.memory_space<smem>>
    %45 = vector.broadcast %44 : f32 to vector<2x1xf32>
    %46 = arith.addf %43, %45 : vector<2x1xf32>
    %c0_19 = arith.constant 0 : index
    %c0_20 = arith.constant 0 : index
    %47 = vector.load %arg10[%c0_19, %c0_20] : memref<2x1xf32, #tpu.memory_space<vmem>>, vector<2x1xf32>
    tpu.vector_store %arg10[%c0_19, %c0_20], %46 {strides = array<i32>} : memref<2x1xf32, #tpu.memory_space<vmem>>, vector<2x1xf32>,
    return
  }
  func.func @transform_0(%arg0: i32) -> (i32, i32) {
    %c0_i32 = arith.constant 0 : i32
    %c0_i32_0 = arith.constant 0 : i32
    return %arg0, %c0_i32 : i32, i32
  }
  func.func @transform_1(%arg0: i32) -> (i32, i32) {
    %c0_i32 = arith.constant 0 : i32
    %c0_i32_0 = arith.constant 0 : i32
    return %arg0, %c0_i32 : i32, i32
  }
  func.func @transform_2(%arg0: i32) -> (i32, i32) {
    %c0_i32 = arith.constant 0 : i32
    %c0_i32_0 = arith.constant 0 : i32
    %c0_i32_1 = arith.constant 0 : i32
    return %c0_i32, %c0_i32_0 : i32, i32
  }
  func.func @transform_3(%arg0: i32) -> (i32, i32) {
    %c0_i32 = arith.constant 0 : i32
    %c0_i32_0 = arith.constant 0 : i32
    %c0_i32_1 = arith.constant 0 : i32
    return %c0_i32, %c0_i32_0 : i32, i32
  }
  func.func @transform_4(%arg0: i32) -> (i32, i32) {
    %c0_i32 = arith.constant 0 : i32
    %c0_i32_0 = arith.constant 0 : i32
    %c0_i32_1 = arith.constant 0 : i32
    return %c0_i32, %c0_i32_0 : i32, i32
  }
  func.func @transform_5(%arg0: i32) -> (i32, i32) {
    %c0_i32 = arith.constant 0 : i32
    %c0_i32_0 = arith.constant 0 : i32
    %c0_i32_1 = arith.constant 0 : i32
    return %c0_i32, %c0_i32_0 : i32, i32
  }
  func.func @transform_6(%arg0: i32) -> (i32, i32) {
    %c0_i32 = arith.constant 0 : i32
    %c0_i32_0 = arith.constant 0 : i32
    %c0_i32_1 = arith.constant 0 : i32
    return %c0_i32, %c0_i32_0 : i32, i32
  }
  func.func @transform_7(%arg0: i32) -> (i32, i32) {
    %c0_i32 = arith.constant 0 : i32
    %c0_i32_0 = arith.constant 0 : i32
    %c0_i32_1 = arith.constant 0 : i32
    return %c0_i32, %c0_i32_0 : i32, i32
  }
  func.func @transform_8(%arg0: i32) -> i32 {
    %c0_i32 = arith.constant 0 : i32
    %c0_i32_0 = arith.constant 0 : i32
    return %c0_i32 : i32
  }
  func.func @transform_9(%arg0: i32) -> (i32, i32) {
    %c0_i32 = arith.constant 0 : i32
    %c0_i32_0 = arith.constant 0 : i32
    return %arg0, %c0_i32 : i32, i32
  }
}

</mosaic_0001>

<bundles_post_ra>
// kernel: tpu_custom_call.1
= control target key start
LH: loop header
LB: loop body
LE: loop exit
PB: predicated region body
PF: predicated region fallthrough
CT: control target
= control target key end

     0   :  { %15 = vsyncpa [#allocation4], 0  ;;  %s559_s30 = smov [#allocation3]   ;;  %s672_s0 = inlined_call_operand.vmem [shape: f32[2,3], index: 0, kind: input, shape index: {}]   ;;  %s673_s1 = inlined_call_operand.vmem [shape: f32[2,1], index: 1, kind: input, shape index: {}]   ;;  %s674_s2 = inlined_call_operand.vmem [shape: f32[3,256], index: 2, kind: input, shape index: {}]   ;;  %s675_s3 = inlined_call_operand.vmem [shape: f32[1,256], index: 3, kind: input, shape index: {}]   ;;  %s676_s4 = inlined_call_operand.vmem [shape: f32[1,256], index: 4, kind: input, shape index: {}]   ;;  %s677_s5 = inlined_call_operand.hbm [shape: bf16[256,256], index: 5, kind: input, shape index: {}]   ;;  %s678_s6 = inlined_call_operand.vmem [shape: f32[1,256], index: 6, kind: input, shape index: {}]   ;;  %s679_s7 = inlined_call_operand.vmem [shape: f32[1,256], index: 7, kind: input, shape index: {}]   ;;  %s680_s8 = inlined_call_operand.<no memory space> [shape: f32[1], index: 8, kind: input, shape index: {}]   ;;  %s681_s9 = inlined_call_operand.vmem [shape: f32[2,1], index: 9, kind: output, shape index: {}]  }
   0x1   :  { %s31_s10 = sshll.u32 %s559_s30, 4  ;;  %s535_s13 = scalar_lea.hbm %s677_s5, 4096  ;;  %s32_s10 = int_to_ptr.vmem [resolvable:$true] %s31_s10 }
   0x2   :  { %p536_p0 = scmp.ne.s32.totalorder %s677_s5, %s535_s13  ;;  %p539_p1 = scmp.lt.u32.totalorder %s535_s13, %s677_s5 }
   0x4   :  { %p541_p2 = pnand %p539_p1, %p536_p0 }
   0x6   :  { %544 = shalt.err (!%p541_p2)
}
   0x7   :  { %s545_s18 = scalar_lea.vmem %s32_s10, 4096  ;;  %p550_p4 = scmp.lt.s32.totalorder %s32_s10, %s32_s10 }
   0x8   :  { %p546_p3 = scmp.ne.s32.totalorder %s32_s10, %s545_s18  ;;  %p551_p5 = scmp.lt.s32.totalorder %s545_s18, %s545_s18 }
   0xa   :  { %p552_p6 = por %p551_p5, %p550_p4 }
   0xc   :  { %p553_p7 = pnand %p552_p6, %p546_p3 }
   0xe   :  { %556 = shalt.err (!%p553_p7)
}
   0xf   :  { %s560_s19 = smov 128   ;;  %s561_s20 = smov 8  }
  0x10   :  { %37 = dma.hbm_to_vmem [thread:$0]  %s677_s5, 4096, %s32_s10, [#allocation4], %s560_s19, %s560_s19, %s561_s20  }
  0x11   :  { %557 = dma.done.wait [#allocation4], 4096  }
  0x12   :  { %558 = vsyncadd [#allocation4], 4294963200  ;;  %v562_v0 = vmov 0   ;;  %v563_v1 = vmov 2   ;;  %v47_v2 = vld [vmem:[%s672_s0] sm:$0x3]  ;;  %v53_v37 = vlaneseq }
  0x13   :  { %482 = vset.pattern.permute.xlu0 %v562_v0  ;;  %484 = vset.pattern.permute.xlu1 %v563_v1  ;;  %v487_v3 = vld [vmem:[#allocation3 + $0x4] ss:$8 sps:$4 sm:$0xff]   ;;  %v489_v4 = vld [vmem:[#allocation3] ss:$8 sps:$4 sm:$0xff]   ;;  %v490_v6 = vld [vmem:[#allocation3 + $0x14] ss:$8 sps:$4 sm:$0xff]  }
  0x14   :  { %65 = vperm.xlu0 %482, %v47_v2   ;;  %118 = vperm.xlu1 %484, %v47_v2   ;;  %v48_v5 = vld [vmem:[%s673_s1] sm:$0x3]  ;;  %v492_v7 = vld [vmem:[#allocation3 + $0x10] ss:$8 sps:$4 sm:$0xff]   ;;  %v564_v8 = vmov 1   ;;  %v54_v38 = vshrl.u32 %v53_v37, 7 }
  0x15   :  { %371 = vmatprep.subr.bf16.mxu0 %v487_v3  ;;  %v493_v9 = vld [vmem:[#allocation3 + $0x24] ss:$8 sps:$4 sm:$0xff]   ;;  %v495_v10 = vld [vmem:[#allocation3 + $0x20] ss:$8 sps:$4 sm:$0xff]   ;;  %v496_v11 = vld [vmem:[#allocation3 + $0x34] ss:$8 sps:$4 sm:$0xff]  }
  0x16   :  { %372 = vmatpush1.bf16.msra.mxu0 %v489_v4  ;;  %v498_v12 = vld [vmem:[#allocation3 + $0x30] ss:$8 sps:$4 sm:$0xff]   ;;  %v499_v13 = vld [vmem:[#allocation3 + $0x44] ss:$8 sps:$4 sm:$0xff]   ;;  %v501_v14 = vld [vmem:[#allocation3 + $0x40] ss:$8 sps:$4 sm:$0xff]  }
  0x17   :  { %373 = vmatprep.subr.bf16.mxu0 %v490_v6  ;;  %v502_v15 = vld [vmem:[#allocation3 + $0x54] ss:$8 sps:$4 sm:$0xff]   ;;  %v504_v16 = vld [vmem:[#allocation3 + $0x50] ss:$8 sps:$4 sm:$0xff]   ;;  %v505_v17 = vld [vmem:[#allocation3 + $0x64] ss:$8 sps:$4 sm:$0xff]  }
  0x18   :  { %483 = vset.pattern.permute.xlu0 %v564_v8  ;;  %485 = vset.pattern.permute.xlu1 %v562_v0  ;;  %v507_v18 = vld [vmem:[#allocation3 + $0x60] ss:$8 sps:$4 sm:$0xff]   ;;  %v508_v19 = vld [vmem:[#allocation3 + $0x74] ss:$8 sps:$4 sm:$0xff]   ;;  %v510_v20 = vld [vmem:[#allocation3 + $0x70] ss:$8 sps:$4 sm:$0xff]  }
  0x19   :  { %92 = vperm.xlu0 %483, %v47_v2   ;;  %145 = vperm.xlu1 %485, %v48_v5   ;;  %v511_v21 = vld [vmem:[#allocation3 + $0x84] ss:$8 sps:$4 sm:$0xff]   ;;  %v513_v22 = vld [vmem:[#allocation3 + $0x80] ss:$8 sps:$4 sm:$0xff]   ;;  %v514_v23 = vld [vmem:[#allocation3 + $0x94] ss:$8 sps:$4 sm:$0xff]  }
  0x1a   :  { %374 = vmatpush1.bf16.msra.mxu0 %v492_v7  ;;  %v516_v24 = vld [vmem:[#allocation3 + $0x90] ss:$8 sps:$4 sm:$0xff]   ;;  %v517_v25 = vld [vmem:[#allocation3 + $0xa4] ss:$8 sps:$4 sm:$0xff]   ;;  %v519_v26 = vld [vmem:[#allocation3 + $0xa0] ss:$8 sps:$4 sm:$0xff]  }
  0x1b   :  { %375 = vmatprep.subr.bf16.mxu0 %v493_v9  ;;  %v520_v27 = vld [vmem:[#allocation3 + $0xb4] ss:$8 sps:$4 sm:$0xff]   ;;  %v522_v28 = vld [vmem:[#allocation3 + $0xb0] ss:$8 sps:$4 sm:$0xff]   ;;  %v523_v29 = vld [vmem:[#allocation3 + $0xc4] ss:$8 sps:$4 sm:$0xff]  }
  0x1c   :  { %v525_v30 = vld [vmem:[#allocation3 + $0xc0] ss:$8 sps:$4 sm:$0xff]   ;;  %v526_v31 = vld [vmem:[#allocation3 + $0xd4] ss:$8 sps:$4 sm:$0xff]   ;;  %v528_v32 = vld [vmem:[#allocation3 + $0xd0] ss:$8 sps:$4 sm:$0xff]  }
  0x1d   :  { %486 = vset.pattern.permute.xlu0 %v562_v0  ;;  %v529_v33 = vld [vmem:[#allocation3 + $0xe4] ss:$8 sps:$4 sm:$0xff]   ;;  %v531_v34 = vld [vmem:[#allocation3 + $0xe0] ss:$8 sps:$4 sm:$0xff]   ;;  %v532_v35 = vld [vmem:[#allocation3 + $0xf4] ss:$8 sps:$4 sm:$0xff]  }
  0x1e   :  { %376 = vmatpush1.bf16.msra.mxu0 %v495_v10  ;;  %v534_v36 = vld [vmem:[#allocation3 + $0xf0] ss:$8 sps:$4 sm:$0xff]   ;;  %v633_v39 = vsub.s32 0, %v54_v38  ;;  %v75_v40 = vsub.s32 4, %v54_v38  ;;  %v49_v41 = vld [vmem:[%s674_s2] sm:$0x77] }
  0x1f   :  { %377 = vmatprep.subr.bf16.mxu0 %v496_v11  ;;  %v638_v42 = vsub.s32 1, %v54_v38  ;;  %v101_v45 = vsub.s32 5, %v54_v38  ;;  %v123_v46 = vsub.s32 2, %v54_v38  ;;  %v127_v47 = vsub.s32 6, %v54_v38  ;;  %v51_v48 = vld [vmem:[%s676_s4] sm:$0x3] }
  0x20   :  { %v72_v43 = vrot.slane %v49_v41, %v633_v39  ;;  %v76_v44 = vrot.slane %v49_v41, %v75_v40  ;;  %v56_v57 = vrot.slane %v51_v48, %v633_v39  ;;  %v50_v59 = vld [vmem:[%s675_s3] sm:$0x3]  ;;  %vm428_vm0 = vcmask 1041408  }
  0x21   :  { %v98_v51 = vrot.slane %v49_v41, %v638_v42  ;;  %v102_v52 = vrot.slane %v49_v41, %v101_v45  ;;  %v124_v53 = vrot.slane %v49_v41, %v123_v46  ;;  %v128_v54 = vrot.slane %v49_v41, %v127_v47 }
  0x22   :  { %378 = vmatpush1.bf16.msra.mxu0 %v498_v12  ;;  %v82_v49 = vrot.slane %v72_v43, %v633_v39  ;;  %v86_v50 = vrot.slane %v76_v44, %v633_v39  ;;  %v60_v58 = vrot.slane %v51_v48, %v638_v42  ;;  %v152_v2 = vrot.slane %v50_v59, %v633_v39 }
  0x23   :  { %379 = vmatprep.subr.bf16.mxu0 %v499_v13  ;;  %v108_v62 = vrot.slane %v98_v51, %v638_v42  ;;  %v112_v63 = vrot.slane %v102_v52, %v638_v42  ;;  %v134_v0 = vrot.slane %v124_v53, %v123_v46  ;;  %v138_v1 = vrot.slane %v128_v54, %v123_v46 }
  0x24   :  { %v156_v3 = vrot.slane %v50_v59, %v638_v42  ;;  %v435_v45 = vstv %s680_s8  ;;  %vm437_vm1 = vcmask 1024  }
  0x26   :  { %380 = vmatpush1.bf16.msra.mxu0 %v501_v14 }
  0x27   :  { %381 = vmatprep.subr.bf16.mxu0 %v502_v15 }
  0x2a   :  { %382 = vmatpush1.bf16.msra.mxu0 %v504_v16 }
  0x2b   :  { %383 = vmatprep.subr.bf16.mxu0 %v505_v17 }
  0x2e   :  { %384 = vmatpush1.bf16.msra.mxu0 %v507_v18 }
  0x2f   :  { %385 = vmatprep.subr.bf16.mxu0 %v508_v19 }
  0x32   :  { %386 = vmatpush1.bf16.msra.mxu0 %v510_v20 }
  0x33   :  { %387 = vmatprep.subr.bf16.mxu0 %v511_v21 }
  0x36   :  { %388 = vmatpush1.bf16.msra.mxu0 %v513_v22 }
  0x37   :  { %389 = vmatprep.subr.bf16.mxu0 %v514_v23 }
  0x3a   :  { %390 = vmatpush1.bf16.msra.mxu0 %v516_v24  ;;  %v199_v24 = vld [vmem:[%s678_s6] sm:$0x3] }
  0x3b   :  { %391 = vmatprep.subr.bf16.mxu0 %v517_v25  ;;  %v204_v25 = vrot.slane %v199_v24, %v633_v39 }
  0x3e   :  { %392 = vmatpush1.bf16.msra.mxu0 %v519_v26  ;;  %v414_v26 = vld [vmem:[%s679_s7] sm:$0x3] }
  0x3f   :  { %393 = vmatprep.subr.bf16.mxu0 %v520_v27  ;;  %v208_v27 = vrot.slane %v199_v24, %v638_v42 }
  0x42   :  { %394 = vmatpush1.bf16.msra.mxu0 %v522_v28 }
  0x43   :  { %395 = vmatprep.subr.bf16.mxu0 %v523_v29 }
  0x46   :  { %396 = vmatpush1.bf16.msra.mxu0 %v525_v30  ;;  %v419_v30 = vrot.slane %v414_v26, %v633_v39 }
  0x47   :  { %397 = vmatprep.subr.bf16.mxu0 %v526_v31 }
  0x4a   :  { %398 = vmatpush1.bf16.msra.mxu0 %v528_v32 }
  0x4b   :  { %399 = vmatprep.subr.bf16.mxu0 %v529_v33  ;;  %v423_v33 = vrot.slane %v414_v26, %v638_v42 }
  0x4e   :  { %400 = vmatpush1.bf16.msra.mxu0 %v531_v34 }
  0x4f   :  { %401 = vmatprep.subr.bf16.mxu0 %v532_v35 }
  0x52   :  { %402 = vmatpush1.bf16.msra.mxu0 %v534_v36 }
  0x93   :  { %v66_v55 = vpop.permute.xlu0 %65  ;;  %v119_v56 = vpop.permute.xlu1 %118 }
  0x94   :  { %v87_v60 = vmul.f32 %v82_v49, %v66_v55  ;;  %v88_v61 = vmul.f32 %v86_v50, %v66_v55  ;;  %v139_v10 = vmul.f32 %v134_v0, %v119_v56  ;;  %v140_v11 = vmul.f32 %v138_v1, %v119_v56 }
  0x96   :  { %v89_v6 = vadd.f32 %v87_v60, %v56_v57  ;;  %v90_v7 = vadd.f32 %v88_v61, %v60_v58 }
  0x98   :  { %v93_v4 = vpop.permute.xlu0 %92  ;;  %v146_v5 = vpop.permute.xlu1 %145 }
  0x99   :  { %v113_v8 = vmul.f32 %v108_v62, %v93_v4  ;;  %v114_v9 = vmul.f32 %v112_v63, %v93_v4  ;;  %v159_v14 = vmul.f32 %v152_v2, %v146_v5  ;;  %v160_v15 = vmul.f32 %v156_v3, %v146_v5 }
  0x9b   :  { %v115_v12 = vadd.f32 %v113_v8, %v89_v6  ;;  %v116_v13 = vadd.f32 %v114_v9, %v90_v7 }
  0x9d   :  { %v141_v16 = vadd.f32 %v139_v10, %v115_v12  ;;  %v142_v17 = vadd.f32 %v140_v11, %v116_v13 }
  0x9f   :  { %v161_v18 = vadd.f32 %v159_v14, %v141_v16  ;;  %v162_v19 = vadd.f32 %v160_v15, %v142_v17 }
  0xa1   :  { %v163_v20 = vmax.f32 %v161_v18, 0.0  ;;  %v164_v21 = vmax.f32 %v162_v19, 0.0 }
  0xa3   :  { %v166_v22 = vpack.c.bf16 %v164_v21, %v164_v21  ;;  %v165_v23 = vpack.c.bf16 %v163_v20, %v163_v20 }
  0xa5   :  { %403 = vmatprep.mubr.bf16.mxu0 %v166_v22 }
  0xa6   :  { %404 = vmatmul.mubr.bf16.vlgmr.msra.gmra.mrb[0].mxu0 %v165_v23 }
 0x179   :  { %v405_v28 = vpop.f32.mrb[0].mxu0 }
 0x17a   :  { %v406_v29 = vadd.f32 %v405_v28, %v204_v25  ;;  %v407_v31 = vpop.f32.mrb[1].mxu0 }
 0x17b   :  { %v408_v32 = vadd.f32 %v407_v31, %v208_v27  ;;  %v409_v34 = vpop.f32.mrb[2].mxu0 }
 0x17c   :  { %v412_v35 = vmax.f32 %v406_v29, 0.0  ;;  %v410_v36 = vpop.f32.mrb[3].mxu0 }
 0x17d   :  { %v413_v37 = vmax.f32 %v408_v32, 0.0 }
 0x17e   :  { %v426_v38 = vmul.f32 %v419_v30, %v412_v35 }
 0x17f   :  { %v427_v40 = vmul.f32 %v423_v33, %v413_v37 }
 0x180   :  { %v429_v41 = vsel %vm428_vm0, %v426_v38, 0.0 }
 0x181   :  { %v430_v43 = vsel %vm428_vm0, %v427_v40, 0.0 }
 0x182   :  { %v431_v44 = vadd.f32 %v430_v43, %v429_v41 }
 0x184   :  { %432 = vadd.xlane.f32.xlu1 %v431_v44 }
 0x211   :  { %v433_v39 = vpop.xlane.xlu1 %432 }
 0x212   :  { %v436_v46 = vadd.f32 %v435_v45, %v433_v39 }
 0x214   :  { %438 = vst.msk [vmem:[%s681_s9] sm:$0x3] %vm437_vm1, %v436_v46 }
 0x215   :  { %443 = vsyncpa [#allocation4], 1 }

</bundles_post_ra>
